<compile_context>
chip_gen: v7x
topology: tpu7x:2x2x1
jax: 0.10.0
libtpu: 0.0.40
codegen_flags: <defaults>
</compile_context>

<pallas_src>
import math

import jax
import jax.numpy as jnp
from jax import lax
from jax.experimental import pallas as pl
from jax.experimental.pallas import tpu as pltpu


def make_cgqa_kernel(num_heads, num_kv_groups, head_dim):
    if num_heads % num_kv_groups != 0:
        raise ValueError("num_heads must be divisible by num_kv_groups")
    rep = num_heads // num_kv_groups
    D = head_dim

    def kernel(xq_ref, xkv_ref, wq_ref, wk_ref, wv_ref, wo_ref, out_ref,
               k_scr, v_scr):
        # K/V projections: once per batch (first Sq tile), cached in VMEM
        # scratch across the remaining Sq tiles of the same batch.
        @pl.when(pl.program_id(1) == 0)
        def _():
            xkv = xkv_ref[0]                                   # (Skv, E) bf16
            k_scr[...] = jnp.dot(
                xkv, wk_ref[...],
                preferred_element_type=jnp.float32).astype(jnp.bfloat16)
            v_scr[...] = jnp.dot(
                xkv, wv_ref[...],
                preferred_element_type=jnp.float32).astype(jnp.bfloat16)

        # Q projection (scale already folded into Wq); single bf16 cast.
        xq = xq_ref[0]                                          # (TSq, E) bf16
        q = jnp.dot(xq, wq_ref[...],
                    preferred_element_type=jnp.float32
                    ).astype(jnp.bfloat16)                      # (TSq, H*D)

        # Grouped-query attention: head h uses KV group h // rep
        # (matches torch.repeat_interleave(rep, dim=1) on the head axis).
        o_parts = []
        for g in range(num_kv_groups):
            k_g = k_scr[:, g * D:(g + 1) * D]                   # (Skv, D) bf16
            v_g = v_scr[:, g * D:(g + 1) * D]                   # (Skv, D) bf16
            for r in range(rep):
                h = g * rep + r
                q_h = q[:, h * D:(h + 1) * D]                   # (TSq, D) bf16
                # q·kᵀ without an explicit transpose: contract the D dims.
                s = lax.dot_general(
                    q_h, k_g, (((1,), (1,)), ((), ())),
                    preferred_element_type=jnp.float32)         # (TSq, Skv) f32
                # Softmax in f32; denominator reciprocal on the EUP.
                s = s - jnp.max(s, axis=-1, keepdims=True)
                e = jnp.exp(s)
                p = (e * pl.reciprocal(jnp.sum(e, axis=-1, keepdims=True),
                                       approx=True)).astype(jnp.bfloat16)
                o_parts.append(
                    jnp.dot(p, v_g,
                            preferred_element_type=jnp.float32
                            ).astype(jnp.bfloat16))             # (TSq, D)

        # One fused output projection: (TSq, H*D) @ (H*D, out_dim_padded).
        o = jnp.concatenate(o_parts, axis=-1)                   # (TSq, H*D) bf16
        out_ref[0] = jnp.dot(o, wo_ref[...],
                             preferred_element_type=jnp.float32
                             ).astype(out_ref.dtype)

    return kernel


def _round_up(x, m):
    return ((x + m - 1) // m) * m


def cross_gqa_pallas(x_q, x_kv, wq, wk, wv, wo, num_heads, num_kv_groups,
                     *, max_sq_tile=256):
    B, Sq, E = x_q.shape
    _, Skv, _ = x_kv.shape
    out_dim = wo.shape[1]
    head_dim = wq.shape[1] // num_heads
    scale = 1.0 / math.sqrt(head_dim)
    out_dtype = x_q.dtype

    # Sq tile: multiple of 8 (sublane), capped; pad Sq so it divides evenly.
    TSq = min(_round_up(Sq, 8), _round_up(max_sq_tile, 8))
    Sq_p = _round_up(Sq, TSq)
    if Sq_p != Sq:
        x_q = jnp.pad(x_q, ((0, 0), (0, Sq_p - Sq), (0, 0)))
    n_sq_tiles = Sq_p // TSq

    # Lane-dense output: pad out_dim to a multiple of 128 (zero Wo columns).
    out_dim_p = _round_up(out_dim, 128)
    wo_p = wo if out_dim_p == out_dim else jnp.pad(
        wo, ((0, 0), (0, out_dim_p - out_dim)))

    # bf16 casts on the host (halves activation/weight DMA); fold 1/sqrt(D)
    # into Wq so the kernel never scales q per head.
    xq_b = x_q.astype(jnp.bfloat16)
    xkv_b = x_kv.astype(jnp.bfloat16)
    wq_b = (wq * scale).astype(jnp.bfloat16)
    wk_b = wk.astype(jnp.bfloat16)
    wv_b = wv.astype(jnp.bfloat16)
    wo_b = wo_p.astype(jnp.bfloat16)

    gd = num_kv_groups * head_dim
    kernel = make_cgqa_kernel(num_heads, num_kv_groups, head_dim)

    out = pl.pallas_call(
        kernel,
        out_shape=jax.ShapeDtypeStruct((B, Sq_p, out_dim_p), out_dtype),
        grid_spec=pltpu.PrefetchScalarGridSpec(
            num_scalar_prefetch=0,
            grid=(B, n_sq_tiles),
            in_specs=[
                pl.BlockSpec((1, TSq, E), lambda b, s: (b, s, 0)),
                # x_kv block index depends only on b -> DMA'd once per batch.
                pl.BlockSpec((1, Skv, E), lambda b, s: (b, 0, 0)),
                pl.BlockSpec(wq_b.shape, lambda b, s: (0, 0)),
                pl.BlockSpec(wk_b.shape, lambda b, s: (0, 0)),
                pl.BlockSpec(wv_b.shape, lambda b, s: (0, 0)),
                pl.BlockSpec(wo_b.shape, lambda b, s: (0, 0)),
            ],
            out_specs=pl.BlockSpec((1, TSq, out_dim_p), lambda b, s: (b, s, 0)),
            scratch_shapes=[
                pltpu.VMEM((Skv, gd), jnp.bfloat16),   # cached K projection
                pltpu.VMEM((Skv, gd), jnp.bfloat16),   # cached V projection
            ],
        ),
        compiler_params=pltpu.CompilerParams(
            dimension_semantics=("parallel", "arbitrary")),
    )(xq_b, xkv_b, wq_b, wk_b, wv_b, wo_b)

    return out[:, :Sq, :out_dim]


def cross_gqa_ref(x_q, x_kv, wq, wk, wv, wo, num_heads, num_kv_groups):
    """Pure-JAX f32 reference mirroring the PyTorch forward exactly."""
    B, Sq, _ = x_q.shape
    Skv = x_kv.shape[1]
    out_dim = wo.shape[1]
    head_dim = out_dim // num_heads
    rep = num_heads // num_kv_groups

    q = (x_q @ wq).reshape(B, Sq, num_heads, head_dim).transpose(0, 2, 1, 3)
    k = (x_kv @ wk).reshape(B, Skv, num_kv_groups, head_dim).transpose(0, 2, 1, 3)
    v = (x_kv @ wv).reshape(B, Skv, num_kv_groups, head_dim).transpose(0, 2, 1, 3)
    k = jnp.repeat(k, rep, axis=1)
    v = jnp.repeat(v, rep, axis=1)
    s = jnp.einsum("bhqd,bhkd->bhqk", q, k) / math.sqrt(head_dim)
    p = jax.nn.softmax(s, axis=-1)
    o = jnp.einsum("bhqk,bhkd->bhqd", p, v)
    o = o.transpose(0, 2, 1, 3).reshape(B, Sq, num_heads * head_dim)
    return o @ wo


if __name__ == "__main__":
    # Small shapes consistent with the module.
    B, Sq, Skv = 2, 8, 16
    embed_dim = 32
    out_dim = 32
    num_heads = 4
    num_kv_groups = 2
    head_dim = out_dim // num_heads

    key = jax.random.PRNGKey(0)
    kxq, kxkv, kq, kk, kv, ko = jax.random.split(key, 6)

    x_q = jax.random.normal(kxq, (B, Sq, embed_dim), dtype=jnp.float32)
    x_kv = jax.random.normal(kxkv, (B, Skv, embed_dim), dtype=jnp.float32)

    # Weights stored as (in, out) == nn.Linear.weight.T
    wq = jax.random.normal(kq, (embed_dim, num_heads * head_dim), jnp.float32) * 0.05
    wk = jax.random.normal(kk, (embed_dim, num_kv_groups * head_dim), jnp.float32) * 0.05
    wv = jax.random.normal(kv, (embed_dim, num_kv_groups * head_dim), jnp.float32) * 0.05
    wo = jax.random.normal(ko, (num_heads * head_dim, out_dim), jnp.float32) * 0.05

    out = cross_gqa_pallas(x_q, x_kv, wq, wk, wv, wo, num_heads, num_kv_groups)
    out = jax.block_until_ready(out)

    ref = cross_gqa_ref(x_q, x_kv, wq, wk, wv, wo, num_heads, num_kv_groups)
    assert out.shape == (B, Sq, out_dim)
    assert jnp.allclose(out, ref, atol=2e-2, rtol=2e-2), "mismatch vs reference"

    print("KERNEL_OK")
</pallas_src>

<mosaic_0001>
module attributes {stable_mosaic.version = 11 : i64} {
  func.func @kernel(%arg0: i32, %arg1: i32, %arg2: memref<1x8x32xbf16, #tpu.memory_space<vmem>>, %arg3: memref<1x16x32xbf16, #tpu.memory_space<vmem>>, %arg4: memref<32x32xbf16, #tpu.memory_space<vmem>>, %arg5: memref<32x16xbf16, #tpu.memory_space<vmem>>, %arg6: memref<32x16xbf16, #tpu.memory_space<vmem>>, %arg7: memref<32x128xbf16, #tpu.memory_space<vmem>>, %arg8: memref<1x8x128xf32, #tpu.memory_space<vmem>>, %arg9: memref<16x16xbf16, #tpu.memory_space<vmem>>, %arg10: memref<16x16xbf16, #tpu.memory_space<vmem>>) attributes {dimension_semantics = [#tpu.dimension_semantics<parallel>, #tpu.dimension_semantics<arbitrary>], iteration_bounds = array<i64: 2, 1>, scalar_prefetch = 0 : i64, scratch_operands = 2 : i64, tpu.core_type = #tpu.core_type<tc>, window_params = [{transform_indices = @transform_0, window_bounds = array<i64: 1, 8, 32>}, {transform_indices = @transform_1, window_bounds = array<i64: 1, 16, 32>}, {pipeline_mode = #tpu.pipeline_mode<synchronous>, transform_indices = @transform_2, window_bounds = array<i64: 32, 32>}, {pipeline_mode = #tpu.pipeline_mode<synchronous>, transform_indices = @transform_3, window_bounds = array<i64: 32, 16>}, {pipeline_mode = #tpu.pipeline_mode<synchronous>, transform_indices = @transform_4, window_bounds = array<i64: 32, 16>}, {pipeline_mode = #tpu.pipeline_mode<synchronous>, transform_indices = @transform_5, window_bounds = array<i64: 32, 128>}, {transform_indices = @transform_6, window_bounds = array<i64: 1, 8, 128>}]} {
    %c0_i32 = arith.constant 0 : i32
    %0 = arith.cmpi eq, %arg1, %c0_i32 : i32
    %1 = arith.extui %0 : i1 to i32
    %c0_i32_0 = arith.constant 0 : i32
    %2 = arith.cmpi ne, %1, %c0_i32_0 : i32
    scf.if %2 {
      %c0_34 = arith.constant 0 : index
      %c0_35 = arith.constant 0 : index
      %c0_36 = arith.constant 0 : index
      %78 = vector.load %arg3[%c0_34, %c0_35, %c0_36] : memref<1x16x32xbf16, #tpu.memory_space<vmem>>, vector<1x16x32xbf16>
      %79 = vector.shape_cast %78 : vector<1x16x32xbf16> to vector<16x32xbf16>
      %c0_37 = arith.constant 0 : index
      %c0_38 = arith.constant 0 : index
      %80 = vector.load %arg5[%c0_37, %c0_38] : memref<32x16xbf16, #tpu.memory_space<vmem>>, vector<32x16xbf16>
      %cst_39 = arith.constant dense<0.000000e+00> : vector<16x16xf32>
      %81 = tpu.matmul %79, %80, %cst_39 {dimension_numbers = #tpu.dot_dimension_numbers<[1], [0], [0], [1], [0, 0, 1, 1], [], []>} : vector<16x32xbf16>, vector<32x16xbf16>, vector<16x16xf32> -> vector<16x16xf32>
      %82 = arith.truncf %81 : vector<16x16xf32> to vector<16x16xbf16>
      %c0_40 = arith.constant 0 : index
      %c0_41 = arith.constant 0 : index
      %83 = vector.load %arg9[%c0_40, %c0_41] : memref<16x16xbf16, #tpu.memory_space<vmem>>, vector<16x16xbf16>
      tpu.vector_store %arg9[%c0_40, %c0_41], %82 {strides = array<i32>} : memref<16x16xbf16, #tpu.memory_space<vmem>>, vector<16x16xbf16>,
      %c0_42 = arith.constant 0 : index
      %c0_43 = arith.constant 0 : index
      %84 = vector.load %arg6[%c0_42, %c0_43] : memref<32x16xbf16, #tpu.memory_space<vmem>>, vector<32x16xbf16>
      %cst_44 = arith.constant dense<0.000000e+00> : vector<16x16xf32>
      %85 = tpu.matmul %79, %84, %cst_44 {dimension_numbers = #tpu.dot_dimension_numbers<[1], [0], [0], [1], [0, 0, 1, 1], [], []>} : vector<16x32xbf16>, vector<32x16xbf16>, vector<16x16xf32> -> vector<16x16xf32>
      %86 = arith.truncf %85 : vector<16x16xf32> to vector<16x16xbf16>
      %c0_45 = arith.constant 0 : index
      %c0_46 = arith.constant 0 : index
      %87 = vector.load %arg10[%c0_45, %c0_46] : memref<16x16xbf16, #tpu.memory_space<vmem>>, vector<16x16xbf16>
      tpu.vector_store %arg10[%c0_45, %c0_46], %86 {strides = array<i32>} : memref<16x16xbf16, #tpu.memory_space<vmem>>, vector<16x16xbf16>,
    } else {
    }
    %c0 = arith.constant 0 : index
    %c0_1 = arith.constant 0 : index
    %c0_2 = arith.constant 0 : index
    %3 = vector.load %arg2[%c0, %c0_1, %c0_2] : memref<1x8x32xbf16, #tpu.memory_space<vmem>>, vector<1x8x32xbf16>
    %4 = vector.shape_cast %3 : vector<1x8x32xbf16> to vector<8x32xbf16>
    %c0_3 = arith.constant 0 : index
    %c0_4 = arith.constant 0 : index
    %5 = vector.load %arg4[%c0_3, %c0_4] : memref<32x32xbf16, #tpu.memory_space<vmem>>, vector<32x32xbf16>
    %cst = arith.constant dense<0.000000e+00> : vector<8x32xf32>
    %6 = tpu.matmul %4, %5, %cst {dimension_numbers = #tpu.dot_dimension_numbers<[1], [0], [0], [1], [0, 0, 1, 1], [], []>} : vector<8x32xbf16>, vector<32x32xbf16>, vector<8x32xf32> -> vector<8x32xf32>
    %7 = arith.truncf %6 : vector<8x32xf32> to vector<8x32xbf16>
    %c0_5 = arith.constant 0 : index
    %c0_6 = arith.constant 0 : index
    %8 = vector.load %arg9[%c0_5, %c0_6] : memref<16x16xbf16, #tpu.memory_space<vmem>>, vector<16x8xbf16>
    %c0_7 = arith.constant 0 : index
    %c0_8 = arith.constant 0 : index
    %9 = vector.load %arg10[%c0_7, %c0_8] : memref<16x16xbf16, #tpu.memory_space<vmem>>, vector<16x8xbf16>
    %10 = vector.extract_strided_slice %7 {offsets = [0, 0], sizes = [8, 8], strides = [1, 1]} : vector<8x32xbf16> to vector<8x8xbf16>
    %cst_9 = arith.constant dense<0.000000e+00> : vector<8x16xf32>
    %11 = tpu.matmul %10, %8, %cst_9 {dimension_numbers = #tpu.dot_dimension_numbers<[1], [1], [0], [0], [0, 0, 1, 0], [], []>} : vector<8x8xbf16>, vector<16x8xbf16>, vector<8x16xf32> -> vector<8x16xf32>
    %cst_10 = arith.constant dense<0xFF800000> : vector<8xf32>
    %12 = vector.multi_reduction <maximumf>, %11, %cst_10 [1] : vector<8x16xf32> to vector<8xf32>
    %13 = vector.shape_cast %12 : vector<8xf32> to vector<8x1xf32>
    %14 = vector.broadcast %13 : vector<8x1xf32> to vector<8x16xf32>
    %15 = arith.subf %11, %14 : vector<8x16xf32>
    %16 = math.exp %15 : vector<8x16xf32>
    %cst_11 = arith.constant dense<0.000000e+00> : vector<8xf32>
    %17 = vector.multi_reduction <add>, %16, %cst_11 [1] : vector<8x16xf32> to vector<8xf32>
    %18 = vector.shape_cast %17 : vector<8xf32> to vector<8x1xf32>
    %19 = tpu.reciprocal %18 {approx = true} : vector<8x1xf32> -> vector<8x1xf32>
    %20 = vector.broadcast %19 : vector<8x1xf32> to vector<8x16xf32>
    %21 = arith.mulf %16, %20 : vector<8x16xf32>
    %22 = arith.truncf %21 : vector<8x16xf32> to vector<8x16xbf16>
    %cst_12 = arith.constant dense<0.000000e+00> : vector<8x8xf32>
    %23 = tpu.matmul %22, %9, %cst_12 {dimension_numbers = #tpu.dot_dimension_numbers<[1], [0], [0], [1], [0, 0, 1, 1], [], []>} : vector<8x16xbf16>, vector<16x8xbf16>, vector<8x8xf32> -> vector<8x8xf32>
    %24 = arith.truncf %23 : vector<8x8xf32> to vector<8x8xbf16>
    %25 = vector.extract_strided_slice %7 {offsets = [0, 8], sizes = [8, 8], strides = [1, 1]} : vector<8x32xbf16> to vector<8x8xbf16>
    %cst_13 = arith.constant dense<0.000000e+00> : vector<8x16xf32>
    %26 = tpu.matmul %25, %8, %cst_13 {dimension_numbers = #tpu.dot_dimension_numbers<[1], [1], [0], [0], [0, 0, 1, 0], [], []>} : vector<8x8xbf16>, vector<16x8xbf16>, vector<8x16xf32> -> vector<8x16xf32>
    %cst_14 = arith.constant dense<0xFF800000> : vector<8xf32>
    %27 = vector.multi_reduction <maximumf>, %26, %cst_14 [1] : vector<8x16xf32> to vector<8xf32>
    %28 = vector.shape_cast %27 : vector<8xf32> to vector<8x1xf32>
    %29 = vector.broadcast %28 : vector<8x1xf32> to vector<8x16xf32>
    %30 = arith.subf %26, %29 : vector<8x16xf32>
    %31 = math.exp %30 : vector<8x16xf32>
    %cst_15 = arith.constant dense<0.000000e+00> : vector<8xf32>
    %32 = vector.multi_reduction <add>, %31, %cst_15 [1] : vector<8x16xf32> to vector<8xf32>
    %33 = vector.shape_cast %32 : vector<8xf32> to vector<8x1xf32>
    %34 = tpu.reciprocal %33 {approx = true} : vector<8x1xf32> -> vector<8x1xf32>
    %35 = vector.broadcast %34 : vector<8x1xf32> to vector<8x16xf32>
    %36 = arith.mulf %31, %35 : vector<8x16xf32>
    %37 = arith.truncf %36 : vector<8x16xf32> to vector<8x16xbf16>
    %cst_16 = arith.constant dense<0.000000e+00> : vector<8x8xf32>
    %38 = tpu.matmul %37, %9, %cst_16 {dimension_numbers = #tpu.dot_dimension_numbers<[1], [0], [0], [1], [0, 0, 1, 1], [], []>} : vector<8x16xbf16>, vector<16x8xbf16>, vector<8x8xf32> -> vector<8x8xf32>
    %39 = arith.truncf %38 : vector<8x8xf32> to vector<8x8xbf16>
    %c0_17 = arith.constant 0 : index
    %c8 = arith.constant 8 : index
    %40 = vector.load %arg9[%c0_17, %c8] : memref<16x16xbf16, #tpu.memory_space<vmem>>, vector<16x8xbf16>
    %c0_18 = arith.constant 0 : index
    %c8_19 = arith.constant 8 : index
    %41 = vector.load %arg10[%c0_18, %c8_19] : memref<16x16xbf16, #tpu.memory_space<vmem>>, vector<16x8xbf16>
    %42 = vector.extract_strided_slice %7 {offsets = [0, 16], sizes = [8, 8], strides = [1, 1]} : vector<8x32xbf16> to vector<8x8xbf16>
    %cst_20 = arith.constant dense<0.000000e+00> : vector<8x16xf32>
    %43 = tpu.matmul %42, %40, %cst_20 {dimension_numbers = #tpu.dot_dimension_numbers<[1], [1], [0], [0], [0, 0, 1, 0], [], []>} : vector<8x8xbf16>, vector<16x8xbf16>, vector<8x16xf32> -> vector<8x16xf32>
    %cst_21 = arith.constant dense<0xFF800000> : vector<8xf32>
    %44 = vector.multi_reduction <maximumf>, %43, %cst_21 [1] : vector<8x16xf32> to vector<8xf32>
    %45 = vector.shape_cast %44 : vector<8xf32> to vector<8x1xf32>
    %46 = vector.broadcast %45 : vector<8x1xf32> to vector<8x16xf32>
    %47 = arith.subf %43, %46 : vector<8x16xf32>
    %48 = math.exp %47 : vector<8x16xf32>
    %cst_22 = arith.constant dense<0.000000e+00> : vector<8xf32>
    %49 = vector.multi_reduction <add>, %48, %cst_22 [1] : vector<8x16xf32> to vector<8xf32>
    %50 = vector.shape_cast %49 : vector<8xf32> to vector<8x1xf32>
    %51 = tpu.reciprocal %50 {approx = true} : vector<8x1xf32> -> vector<8x1xf32>
    %52 = vector.broadcast %51 : vector<8x1xf32> to vector<8x16xf32>
    %53 = arith.mulf %48, %52 : vector<8x16xf32>
    %54 = arith.truncf %53 : vector<8x16xf32> to vector<8x16xbf16>
    %cst_23 = arith.constant dense<0.000000e+00> : vector<8x8xf32>
    %55 = tpu.matmul %54, %41, %cst_23 {dimension_numbers = #tpu.dot_dimension_numbers<[1], [0], [0], [1], [0, 0, 1, 1], [], []>} : vector<8x16xbf16>, vector<16x8xbf16>, vector<8x8xf32> -> vector<8x8xf32>
    %56 = arith.truncf %55 : vector<8x8xf32> to vector<8x8xbf16>
    %57 = vector.extract_strided_slice %7 {offsets = [0, 24], sizes = [8, 8], strides = [1, 1]} : vector<8x32xbf16> to vector<8x8xbf16>
    %cst_24 = arith.constant dense<0.000000e+00> : vector<8x16xf32>
    %58 = tpu.matmul %57, %40, %cst_24 {dimension_numbers = #tpu.dot_dimension_numbers<[1], [1], [0], [0], [0, 0, 1, 0], [], []>} : vector<8x8xbf16>, vector<16x8xbf16>, vector<8x16xf32> -> vector<8x16xf32>
    %cst_25 = arith.constant dense<0xFF800000> : vector<8xf32>
    %59 = vector.multi_reduction <maximumf>, %58, %cst_25 [1] : vector<8x16xf32> to vector<8xf32>
    %60 = vector.shape_cast %59 : vector<8xf32> to vector<8x1xf32>
    %61 = vector.broadcast %60 : vector<8x1xf32> to vector<8x16xf32>
    %62 = arith.subf %58, %61 : vector<8x16xf32>
    %63 = math.exp %62 : vector<8x16xf32>
    %cst_26 = arith.constant dense<0.000000e+00> : vector<8xf32>
    %64 = vector.multi_reduction <add>, %63, %cst_26 [1] : vector<8x16xf32> to vector<8xf32>
    %65 = vector.shape_cast %64 : vector<8xf32> to vector<8x1xf32>
    %66 = tpu.reciprocal %65 {approx = true} : vector<8x1xf32> -> vector<8x1xf32>
    %67 = vector.broadcast %66 : vector<8x1xf32> to vector<8x16xf32>
    %68 = arith.mulf %63, %67 : vector<8x16xf32>
    %69 = arith.truncf %68 : vector<8x16xf32> to vector<8x16xbf16>
    %cst_27 = arith.constant dense<0.000000e+00> : vector<8x8xf32>
    %70 = tpu.matmul %69, %41, %cst_27 {dimension_numbers = #tpu.dot_dimension_numbers<[1], [0], [0], [1], [0, 0, 1, 1], [], []>} : vector<8x16xbf16>, vector<16x8xbf16>, vector<8x8xf32> -> vector<8x8xf32>
    %71 = arith.truncf %70 : vector<8x8xf32> to vector<8x8xbf16>
    %72 = tpu.concatenate %24, %39, %56, %71 in 1 : vector<8x8xbf16>, vector<8x8xbf16>, vector<8x8xbf16>, vector<8x8xbf16> -> vector<8x32xbf16>
    %c0_28 = arith.constant 0 : index
    %c0_29 = arith.constant 0 : index
    %73 = vector.load %arg7[%c0_28, %c0_29] : memref<32x128xbf16, #tpu.memory_space<vmem>>, vector<32x128xbf16>
    %cst_30 = arith.constant dense<0.000000e+00> : vector<8x128xf32>
    %74 = tpu.matmul %72, %73, %cst_30 {dimension_numbers = #tpu.dot_dimension_numbers<[1], [0], [0], [1], [0, 0, 1, 1], [], []>} : vector<8x32xbf16>, vector<32x128xbf16>, vector<8x128xf32> -> vector<8x128xf32>
    %c0_31 = arith.constant 0 : index
    %c0_32 = arith.constant 0 : index
    %c0_33 = arith.constant 0 : index
    %75 = vector.load %arg8[%c0_31, %c0_32, %c0_33] : memref<1x8x128xf32, #tpu.memory_space<vmem>>, vector<1x8x128xf32>
    %76 = vector.shape_cast %75 : vector<1x8x128xf32> to vector<8x128xf32>
    %77 = vector.shape_cast %74 : vector<8x128xf32> to vector<1x8x128xf32>
    tpu.vector_store %arg8[%c0_31, %c0_32, %c0_33], %77 {strides = array<i32>} : memref<1x8x128xf32, #tpu.memory_space<vmem>>, vector<1x8x128xf32>,
    return
  }
  func.func @transform_0(%arg0: i32, %arg1: i32) -> (i32, i32, i32) {
    %c0_i32 = arith.constant 0 : i32
    %c0_i32_0 = arith.constant 0 : i32
    return %arg0, %arg1, %c0_i32 : i32, i32, i32
  }
  func.func @transform_1(%arg0: i32, %arg1: i32) -> (i32, i32, i32) {
    %c0_i32 = arith.constant 0 : i32
    %c0_i32_0 = arith.constant 0 : i32
    %c0_i32_1 = arith.constant 0 : i32
    return %arg0, %c0_i32, %c0_i32_0 : i32, i32, i32
  }
  func.func @transform_2(%arg0: i32, %arg1: i32) -> (i32, i32) {
    %c0_i32 = arith.constant 0 : i32
    %c0_i32_0 = arith.constant 0 : i32
    %c0_i32_1 = arith.constant 0 : i32
    return %c0_i32, %c0_i32_0 : i32, i32
  }
  func.func @transform_3(%arg0: i32, %arg1: i32) -> (i32, i32) {
    %c0_i32 = arith.constant 0 : i32
    %c0_i32_0 = arith.constant 0 : i32
    %c0_i32_1 = arith.constant 0 : i32
    return %c0_i32, %c0_i32_0 : i32, i32
  }
  func.func @transform_4(%arg0: i32, %arg1: i32) -> (i32, i32) {
    %c0_i32 = arith.constant 0 : i32
    %c0_i32_0 = arith.constant 0 : i32
    %c0_i32_1 = arith.constant 0 : i32
    return %c0_i32, %c0_i32_0 : i32, i32
  }
  func.func @transform_5(%arg0: i32, %arg1: i32) -> (i32, i32) {
    %c0_i32 = arith.constant 0 : i32
    %c0_i32_0 = arith.constant 0 : i32
    %c0_i32_1 = arith.constant 0 : i32
    return %c0_i32, %c0_i32_0 : i32, i32
  }
  func.func @transform_6(%arg0: i32, %arg1: i32) -> (i32, i32, i32) {
    %c0_i32 = arith.constant 0 : i32
    %c0_i32_0 = arith.constant 0 : i32
    return %arg0, %arg1, %c0_i32 : i32, i32, i32
  }
}

</mosaic_0001>

<bundles_post_ra>
// kernel: tpu_custom_call.1
= control target key start
LH: loop header
LB: loop body
LE: loop exit
PB: predicated region body
PF: predicated region fallthrough
CT: control target
= control target key end

     0   :  { %11 = vsyncpa [#allocation5], 0  ;;  %s1779_s0 = inlined_call_operand.hbm [shape: bf16[2,8,32], index: 0, kind: input, shape index: {}]   ;;  %s1780_s1 = inlined_call_operand.vmem [shape: bf16[2,16,32], index: 1, kind: input, shape index: {}]   ;;  %s1781_s2 = inlined_call_operand.vmem [shape: bf16[32,32], index: 2, kind: input, shape index: {}]   ;;  %s1782_s3 = inlined_call_operand.vmem [shape: bf16[32,16], index: 3, kind: input, shape index: {}]   ;;  %s1783_s4 = inlined_call_operand.vmem [shape: bf16[32,16], index: 4, kind: input, shape index: {}]   ;;  %s1784_s5 = inlined_call_operand.vmem [shape: bf16[32,128], index: 5, kind: input, shape index: {}]   ;;  %s1785_s6 = inlined_call_operand.hbm [shape: f32[2,8,128], index: 6, kind: output, shape index: {}]  }
   0x1   :  { %13 = vsyncpa [#allocation5 + $0x1], 0 }
   0x2   :  { %14 = vsyncpa [#allocation6], 0 }
   0x3   :  { %16 = vsyncpa [#allocation6 + $0x1], 0  ;;  %s1503_s21 = smov 0   ;;  %s1505_s22 = smov 0  }
   0x4   :  { %s1507_s23 = smov 0   ;;  %s1509_s24 = smov 0  }
   0x5   :  { %s1511_s25 = smov 0   ;;  %s1513_s26 = smov 0  }
   0x6 LB: > { %s1104_s27 = sadd.s32 4294967295, %s1456_s26   ;;  %s1105_s28 = sadd.s32 4294967294, %s1456_s26   ;;  %s1456_s26 = sphi %s1513_s26, %s22_s26   ;;  %s1452_s25 = sphi %s1511_s25, %s1801_s25   ;;  %s1448_s24 = sphi %s1509_s24, %s1800_s24   ;;  %s1444_s23 = sphi %s1507_s23, %s1799_s23   ;;  %s1440_s22 = sphi %s1505_s22, %s1798_s22   ;;  %s1436_s21 = sphi %s1503_s21, %s1797_s21  }
   0x7   : > { %s34_s29 = sadd.s32 1, %s1452_s25  ;;  %s43_s30 = sadd.s32 1, %s1444_s23 }
   0x8   : > { %p36_p0 = scmp.ge.s32.totalorder %s34_s29, 2  ;;  %p50_p1 = scmp.ne.s32.totalorder %s1444_s23, %s1440_s22 }
   0x9   : > { %p51_p2 = scmp.eq.s32.totalorder %s1456_s26, 0  ;;  %p56_p3 = scmp.ne.s32.totalorder %s1440_s22, %s1436_s21 }
   0xa   : > { %s1803_s29 = smov (%p36_p0, %s34_s29), 0  ;;  %p57_p5 = scmp.eq.s32.totalorder %s1104_s27, 0 }
   0xb   : > { %p1544_p4 = por %p51_p2, %p50_p1  ;;  %s38_s8 = ssub.s32 %s1452_s25, %s1803_s29 }
   0xc   : > { %p192_p6 = scmp.eq.s32.totalorder %s1104_s27, 1  ;;  %p41_p7 = scmp.eq.s32.totalorder %s38_s8, 0 }
   0xd   : > { %p1550_p8 = por %p57_p5, %p56_p3  ;;  %p198_p10 = scmp.eq.s32.totalorder %s1105_s28, 1 }
   0xe   : > { %p1554_p9 = por %p192_p6, %p50_p1  ;;  %p1261_p13 = scmp.lt.s32.totalorder %s1456_s26, 2 }
   0xf   : > { %s1559_s11 = scalar_select %p41_p7, %s1444_s23, %s43_s30  }
  0x10   : > { %s1789_s10 = scalar_select %p1554_p9, 1, 0 }
  0x11   : > { %p1561_p11 = por %p198_p10, %p56_p3  ;;  %s230_s13 = sand.u32 1, %s1444_s23  }
  0x12   : > { %s1108_s14 = sshll.u32 %s230_s13, 2  ;;  %s1109_s15 = sshll.u32 %s1452_s25, 6 }
  0x13   : > { %s1790_s12 = scalar_select %p1561_p11, 1, 0 }
  0x14   : > { %s1572_s18 = scalar_lea.hbm %s1779_s0, %s1109_s15  ;;  %s234_s19 = scalar_lea.vmem [#allocation4], %s1108_s14 }
  0x15   : > { %s242_s20 = sshll.u32 %s234_s19, 4  ;;  %p1578_p0 = pnand %p1261_p13, %p1544_p4  ;;  %s1574_s20 = int_to_ptr.vmem [resolvable:$true] %s242_s20 }
  0x16   : > { %s231_s28 = scalar_lea.sflag [#allocation5], %s230_s13  ;;  %s1344_s30 = scalar_lea.hbm %s1572_s18, 64 }
  0x17   : > { %p1345_p3 = scmp.ne.s32.totalorder %s1572_s18, %s1344_s30  ;;  %p1346_p5 = pneg %p1578_p0 }
  0x18   : > { %s1349_s7 = scalar_lea.hbm %s1779_s0, 128  ;;  %p1350_p4 = scmp.lt.u32.totalorder %s1572_s18, %s1779_s0 }
  0x19   : > { %p1347_p6 = pnand %p1346_p5, %p1345_p3  ;;  %p1351_p10 = scmp.lt.u32.totalorder %s1349_s7, %s1344_s30 }
  0x1a   : > { %p1353_p12 = scmp.lt.u32.totalorder %s1344_s30, %s1572_s18 }
  0x1b   : > { %p1348_p7 = pneg %p1347_p6  ;;  %p1352_p13 = por %p1351_p10, %p1350_p4 }
  0x1d   : > { %p1354_p1 = por %p1353_p12, %p1352_p13 }
  0x1f   : > { %p1355_p2 = pnand %p1354_p1, %p1348_p7 }
  0x21   : > { %1358 = shalt.err (!%p1355_p2)
}
  0x22   : > { %s1359_s13 = scalar_lea.vmem %s1574_s20, 64  ;;  %s1458_s17 = smov [#allocation4]  }
  0x23   : > { %p1360_p3 = scmp.ne.s32.totalorder %s1574_s20, %s1359_s13  ;;  %s1364_s19 = sshll.u32 %s1458_s17, 4  ;;  %s1365_s19 = int_to_ptr.vmem [resolvable:$false] %s1364_s19 }
  0x24   : > { %s1366_s8 = scalar_lea.vmem %s1365_s19, 128  ;;  %p1367_p9 = scmp.lt.s32.totalorder %s1574_s20, %s1365_s19 }
  0x25   : > { %p1362_p6 = pnand %p1360_p3, %p1346_p5  ;;  %p1368_p4 = scmp.lt.s32.totalorder %s1366_s8, %s1359_s13 }
  0x27   : > { %p1363_p11 = pneg %p1362_p6  ;;  %p1369_p10 = por %p1368_p4, %p1367_p9 }
  0x29   : > { %p1370_p12 = pnand %p1369_p10, %p1363_p11 }
  0x2b   : > { %1373 = shalt.err (!%p1370_p12)
}
  0x2c   : > { %1256 = dma.hbm_to_vmem [thread:$0]  (!%p1578_p0), %s1572_s18, 64, %s1574_s20, %s231_s28  }
  0x2d   : > { %p1792_p1 = scmp.lt.s32.totalorder %s1456_s26, 3  ;;  %p1793_p2 = scmp.ge.s32.totalorder %s1456_s26, 1 }
  0x2f   : > { %p256_p5 = pnand %p1793_p2, %p1792_p1 }
  0x30   : > { %s1614_s30 = sand.u32 (!%p256_p5), 1, %s1440_s22  }
  0x31   : > { %259 = sbr.rel (%p256_p5) target bundleno = 1509 (0x5e5), region = 44  ;;  %s1111_s14 = sshll.u32 (!%p256_p5), %s1614_s30, 2 }
  0x32   : > { %s262_s7 = scalar_lea.sflag (!%p256_p5), [#allocation5], %s1614_s30  ;;  %s265_s15 = scalar_lea.vmem (!%p256_p5), [#allocation4], %s1111_s14 }
  0x38   : > { %1427 = dma.done.wait (%p1550_p8), %s262_s7, 64  }
  0x39   : > { %1429 = vsyncadd (%p1550_p8), %s262_s7, 4294967232  ;;  %p299_p9 = scmp.lt.s32.totalorder %s1448_s24, 1  ;;  %v1459_v0 = vmov 0.0   ;;  %vm1460_vm0 = vmmov 0   ;;  %v1319_v1 = vld [vmem:[%s1782_s3] sm:$0xff]   ;;  %v1320_v2 = vld [vmem:[%s1782_s3 + $0x8] sm:$0xff]  }
  0x3a   : > { %1169 = vmatprep.subr.bf16.mxu0 %v1459_v0  ;;  %1173 = vmatprep.mubr.msk.bf16.mxu0 %vm1460_vm0, %v1459_v0  ;;  %vm332_vm1 = vcmask 261120   ;;  %v1322_v4 = vld [vmem:[%s1781_s2] sm:$0xff]   ;;  %v1323_v5 = vld [vmem:[%s1781_s2 + $0x8] sm:$0xff]   ;;  %v439_v6 = vld [vmem:[%s265_s15] sm:$0xf]  ;;  %vm378_vm2 = vcmask 130048  }
  0x3b   : > { %s300_s18 = scalar_select %p299_p9, %s1448_s24, 1  ;;  %1177 = vmatprep.subr.bf16.mxu1 %v1459_v0  ;;  %1181 = vmatprep.mubr.msk.bf16.mxu1 %vm1460_vm0, %v1459_v0  ;;  %v1324_v7 = vld [vmem:[%s1783_s4] sm:$0xff]   ;;  %v1325_v8 = vld [vmem:[%s1783_s4 + $0x8] sm:$0xff]   ;;  %vm503_vm3 = vcmask 64512   ;;  %vm935_vm4 = vcmask 195584  }
  0x3c   : > { %1170 = vmatpush3.bf16.msra.mxu0 %v1319_v1  ;;  %1178 = vmatpush3.bf16.msra.mxu1 %v1324_v7  ;;  %s1461_s15 = smov 112   ;;  %s1462_s16 = smov 120  }
  0x3d   : > { %s1140_s20 = sshll.u32 %s300_s18, 3  ;;  %1171 = vmatprep.subr.bf16.mxu0 %v1459_v0  ;;  %1179 = vmatprep.subr.bf16.mxu1 %v1459_v0  ;;  %s1464_s8 = smov 8  }
  0x3e   : > { %s303_s13 = scalar_lea.vmem %s1780_s1, %s1140_s20  ;;  %s1465_s18 = smov 16  }
  0x3f   : > { %v1321_v3 = vld [vmem:[%s303_s13] sm:$0xff]   ;;  %s1463_s13 = smov 104   ;;  %s1466_s20 = smov 24  }
  0x40   : > { %1172 = vmatpush3.bf16.msra.mxu0 %v1320_v2  ;;  %1180 = vmatpush3.bf16.msra.mxu1 %v1325_v8  ;;  %s1112_s27 = sshll.u32 %s1614_s30, 3  ;;  %s998_s19 = scalar_lea.sflag [#allocation6], %s1614_s30 }
  0x41   : > { %1185 = vmatprep.subr.bf16.mxu0 %v1459_v0  ;;  %1193 = vmatprep.subr.bf16.mxu1 %v1459_v0  ;;  %s298_s9 = scalar_lea.vmem [#allocation7], %s1112_s27  ;;  %p1794_p11 = scmp.ne.s32.totalorder %s1789_s10, 0 }
  0x42   : > { %s1012_s28 = sshll.u32 %s298_s9, 4  ;;  %s1727_s28 = int_to_ptr.vmem [resolvable:$true] %s1012_s28 }
  0x43   : > { %1174 = vmatmul.mubr.msk.bf16.vlgmr.msra.gmra.mrb[0].mxu0 %vm332_vm1, %v1321_v3  ;;  %1182 = vmatmul.mubr.msk.bf16.vlgmr.msra.gmra.mrb[0].mxu1 %vm332_vm1, %v1321_v3 }
  0x44   : > { %1186 = vmatpush3.bf16.msra.mxu0 %v1322_v4  ;;  %1189 = vmatprep.mubr.msk.bf16.mxu0 %vm1460_vm0, %v1459_v0 }
  0x45   : > { %1187 = vmatprep.subr.bf16.mxu0 %v1459_v0  ;;  %1195 = vmatprep.mubr.msk.bf16.mxu1 %vm1460_vm0, %v1459_v0 }
  0x48   : > { %1188 = vmatpush3.bf16.msra.mxu0 %v1323_v5 }
  0x49   : > { %1199 = vmatprep.subr.bf16.mxu0 %v1459_v0 }
  0x4b   : > { %1190 = vmatmul.mubr.msk.bf16.vlgmr.msra.gmra.mrb[4].mxu0 %vm332_vm1, %v439_v6 }
  0x4c   : > { %1201 = vmatprep.mubr.msk.bf16.mxu0 %vm1460_vm0, %v1459_v0 }
 0x116   : > { %v370_v9 = vpop.f32.mrb[0].mxu0  ;;  %v430_v21 = vpop.f32.mrb[0].mxu1 }
 0x117   : > { %v1175_v10 = vpop.f32.mrb[1].mxu0  ;;  %v1183_v22 = vpop.f32.mrb[1].mxu1 }
 0x118   : > { %v373_v11 = vpop.f32.mrb[2].mxu0  ;;  %v433_v23 = vpop.f32.mrb[2].mxu1 }
 0x119   : > { %v377_v12 = vpack.c.bf16 %v373_v11, %v370_v9  ;;  %v1176_v13 = vpop.f32.mrb[3].mxu0  ;;  %v437_v24 = vpack.c.bf16 %v433_v23, %v430_v21  ;;  %v1184_v25 = vpop.f32.mrb[3].mxu1 }
 0x11b   : > { %379 = vst.msk [vmem:[#allocation2] sm:$0xff] %vm378_vm2, %v377_v12  ;;  %438 = vst.msk [vmem:[#allocation3] sm:$0xff] %vm378_vm2, %v437_v24 }
 0x11e   : > { %v494_v14 = vpop.f32.mrb[4].mxu0 }
 0x11f   : > { %v500_v15 = vpack.c.bf16 %v494_v14, %v494_v14  ;;  %v1191_v16 = vpop.f32.mrb[5].mxu0 }
 0x120   : > { %v497_v17 = vpop.f32.mrb[6].mxu0 }
 0x121   : > { %709 = vrot.lane.b32.xlu1 %v500_v15, %s1461_s15  ;;  %608 = vrot.lane.b32.xlu0 %v500_v15, %s1462_s16  ;;  %v1192_v18 = vpop.f32.mrb[7].mxu0  ;;  %s1137_s15 = sshll.u32 %s1448_s24, 7  ;;  %s1467_s24 = smov [#allocation7]  }
 0x122   : > { %v501_v19 = vld [vmem:[#allocation2] sm:$0xff]  ;;  %v1676_v26 = vld [vmem:[#allocation3] sm:$0xff]  ;;  %s1732_s17 = scalar_lea.hbm %s1785_s6, %s1137_s15  ;;  %s1378_s14 = sshll.u32 %s1467_s24, 4  ;;  %s1379_s14 = int_to_ptr.vmem [resolvable:$false] %s1378_s14 }
 0x123   : > { %v508_v20 = vsel %vm503_vm3, %v501_v19, 0  ;;  %1200 = vmatpush3.bf16.msra.mxu0 %v1676_v26  ;;  %s1380_s7 = scalar_lea.vmem %s1379_s14, 256  ;;  %p1381_p13 = scmp.lt.s32.totalorder %s1727_s28, %s1379_s14 }
 0x124   : > { %1194 = vmatpush3.bf16.xpose.msra.mxu1 %v508_v20  ;;  %1211 = vmatprep.subr.bf16.mxu0 %v1459_v0 }
 0x125   : > { %820 = vrot.lane.b32.xlu1 %v500_v15, %s1463_s13  ;;  %712 = vrot.lane.b32.xlu0 %v501_v19, %s1462_s16 }
 0x126   : > { %1205 = vmatprep.subr.bf16.mxu1 %v1459_v0 }
 0x12b   : > { %1196 = vmatmul.mubr.msk.bf16.vlgmr.msra.gmra.mrb[4].mxu1 %vm503_vm3, %v500_v15 }
 0x12c   : > { %1206 = vmatpush3.bf16.xpose.msra.mxu1 %v508_v20  ;;  %1207 = vmatprep.mubr.msk.bf16.mxu1 %vm1460_vm0, %v1459_v0 }
 0x12d   : > { %1217 = vmatprep.subr.bf16.mxu1 %v1459_v0 }
 0x193   : > { %v609_v27 = vpop.permute.xlu0 %608  ;;  %v710_v30 = vpop.permute.xlu1 %709 }
 0x194   : > { %1208 = vmatmul.mubr.msk.bf16.vlgmr.msra.gmra.mrb[8].mxu1 %vm503_vm3, %v609_v27 }
 0x195   : > { %1219 = vmatprep.mubr.msk.bf16.mxu1 %vm1460_vm0, %v1459_v0 }
 0x197   : > { %v713_v28 = vpop.permute.xlu0 %712  ;;  %v821_v31 = vpop.permute.xlu1 %820 }
 0x198   : > { %v718_v29 = vsel %vm503_vm3, %v713_v28, 0 }
 0x199   : > { %1218 = vmatpush3.bf16.xpose.msra.mxu1 %v718_v29 }
 0x19a   : > { %1229 = vmatprep.subr.bf16.mxu1 %v1459_v0 }
 0x1a0   : > { %1220 = vmatmul.mubr.msk.bf16.vlgmr.msra.gmra.mrb[12].mxu1 %vm503_vm3, %v710_v30 }
 0x1a1   : > { %1230 = vmatpush3.bf16.xpose.msra.mxu1 %v718_v29  ;;  %1231 = vmatprep.mubr.msk.bf16.mxu1 %vm1460_vm0, %v1459_v0 }
 0x1a2   : > { %1241 = vmatprep.subr.bf16.mxu1 %v1459_v0 }
 0x1a8   : > { %1232 = vmatmul.mubr.msk.bf16.vlgmr.msra.gmra.mrb[16].mxu1 %vm503_vm3, %v821_v31 }
 0x1a9   : > { %1245 = vmatprep.mubr.msk.bf16.mxu1 %vm1460_vm0, %v1459_v0 }
 0x1fe   : > { %v544_v32 = vpop.f32.mrb[4].mxu1 }
 0x1ff   : > { %v1197_v33 = vpop.f32.mrb[5].mxu1  ;;  %v551_v34 = vsel %vm378_vm2, %v544_v32, -inf }
 0x200   : > { %552 = vmax.xlane.f32.xlu0 %v551_v34  ;;  %v547_v35 = vpop.f32.mrb[6].mxu1  ;;  %v1326_v34 = vld [vmem:[%s1784_s5] sm:$0xff]  }
 0x201   : > { %v1198_v36 = vpop.f32.mrb[7].mxu1  ;;  %1242 = vmatpush3.bf16.msra.mxu1 %v1326_v34 }
 0x202   : > { %v1327_v36 = vld [vmem:[%s1784_s5 + $0x8] sm:$0xff]   ;;  %1243 = vmatprep.subr.bf16.mxu1 %v1459_v0 }
 0x205   : > { %1244 = vmatpush3.bf16.msra.mxu1 %v1327_v36 }
 0x267   : > { %v647_v37 = vpop.f32.mrb[8].mxu1 }
 0x268   : > { %v1209_v38 = vpop.f32.mrb[9].mxu1  ;;  %v653_v39 = vsel %vm378_vm2, %v647_v37, -inf }
 0x269   : > { %654 = vmax.xlane.f32.xlu1 %v653_v39  ;;  %v650_v40 = vpop.f32.mrb[10].mxu1 }
 0x26a   : > { %v1210_v41 = vpop.f32.mrb[11].mxu1 }
 0x273   : > { %v754_v42 = vpop.f32.mrb[12].mxu1 }
 0x274   : > { %v1221_v43 = vpop.f32.mrb[13].mxu1  ;;  %v760_v44 = vsel %vm378_vm2, %v754_v42, -inf }
 0x275   : > { %761 = vmax.xlane.f32.xlu0 %v760_v44  ;;  %v757_v45 = vpop.f32.mrb[14].mxu1 }
 0x276   : > { %v1222_v46 = vpop.f32.mrb[15].mxu1 }
 0x27b   : > { %v859_v47 = vpop.f32.mrb[16].mxu1 }
 0x27c   : > { %v1233_v48 = vpop.f32.mrb[17].mxu1  ;;  %v865_v49 = vsel %vm378_vm2, %v859_v47, -inf }
 0x27d   : > { %866 = vmax.xlane.f32.xlu0 %v865_v49  ;;  %v862_v50 = vpop.f32.mrb[18].mxu1 }
 0x27e   : > { %v1234_v51 = vpop.f32.mrb[19].mxu1 }
 0x28d   : > { %v553_v52 = vpop.xlane.xlu0 %552 }
 0x28e   : > { %v554_v53 = vsub.f32 %v544_v32, %v553_v52 }
 0x290   : > { %v555_v54 = vmul.f32 1.442695, %v554_v53 }
 0x292   : > { %1328 = vpow2.f32 %v555_v54 }
 0x29c   : > { %v1329_v55 = vpop.eup %1328 }
 0x29d   : > { %v557_v56 = vsel %vm378_vm2, %v1329_v55, 0.0 }
 0x29e   : > { %558 = vadd.xlane.f32.xlu1 %v557_v56 }
 0x2f6   : > { %v655_v57 = vpop.xlane.xlu1 %654 }
 0x2f7   : > { %v656_v58 = vsub.f32 %v647_v37, %v655_v57 }
 0x2f9   : > { %v657_v59 = vmul.f32 1.442695, %v656_v58 }
 0x2fb   : > { %1330 = vpow2.f32 %v657_v59 }
 0x302   : > { %v762_v60 = vpop.xlane.xlu0 %761 }
 0x303   : > { %v763_v61 = vsub.f32 %v754_v42, %v762_v60 }
 0x305   : > { %v1331_v62 = vpop.eup %1330  ;;  %v764_v63 = vmul.f32 1.442695, %v763_v61 }
 0x306   : > { %v659_v1 = vsel %vm378_vm2, %v1331_v62, 0.0 }
 0x307   : > { %1332 = vpow2.f32 %v764_v63  ;;  %660 = vadd.xlane.f32.xlu0 %v659_v1 }
 0x30a   : > { %v867_v2 = vpop.xlane.xlu0 %866 }
 0x30b   : > { %v868_v3 = vsub.f32 %v859_v47, %v867_v2 }
 0x30d   : > { %v869_v4 = vmul.f32 1.442695, %v868_v3 }
 0x30f   : > { %1334 = vpow2.f32 %v869_v4 }
 0x311   : > { %v1333_v5 = vpop.eup %1332 }
 0x312   : > { %v766_v6 = vsel %vm378_vm2, %v1333_v5, 0.0 }
 0x313   : > { %767 = vadd.xlane.f32.xlu1 %v766_v6 }
 0x319   : > { %v1335_v7 = vpop.eup %1334 }
 0x31a   : > { %v871_v8 = vsel %vm378_vm2, %v1335_v7, 0.0 }
 0x31b   : > { %872 = vadd.xlane.f32.xlu0 %v871_v8 }
 0x324   : > { %773 = vrot.lane.b32.xlu1 %v1676_v26, %s1462_s16 }
 0x32b   : > { %v559_v9 = vpop.xlane.xlu1 %558 }
 0x32c   : > { %1336 = vrcp.f32 %v559_v9 }
 0x336   : > { %v1337_v10 = vpop.eup %1336 }
 0x337   : > { %v561_v11 = vmul.f32 %v1337_v10, %v1329_v55 }
 0x339   : > { %v562_v12 = vpack.c.bf16 %v561_v11, %v561_v11 }
 0x33b   : > { %1202 = vmatmul.mubr.msk.bf16.vlgmr.msra.gmra.mrb[8].mxu0 %vm378_vm2, %v562_v12 }
 0x33c   : > { %1212 = vmatpush3.bf16.msra.mxu0 %v1676_v26  ;;  %1213 = vmatprep.mubr.msk.bf16.mxu0 %vm1460_vm0, %v1459_v0 }
 0x33d   : > { %1223 = vmatprep.subr.bf16.mxu0 %v1459_v0 }
 0x394   : > { %v661_v13 = vpop.xlane.xlu0 %660 }
 0x395   : > { %1338 = vrcp.f32 %v661_v13 }
 0x39f   : > { %v1339_v14 = vpop.eup %1338 }
 0x3a0   : > { %v663_v15 = vmul.f32 %v1339_v14, %v1331_v62  ;;  %v768_v16 = vpop.xlane.xlu1 %767 }
 0x3a1   : > { %1340 = vrcp.f32 %v768_v16 }
 0x3a2   : > { %v664_v17 = vpack.c.bf16 %v663_v15, %v663_v15 }
 0x3a4   : > { %v774_v18 = vpop.permute.xlu1 %773  ;;  %1214 = vmatmul.mubr.msk.bf16.vlgmr.msra.gmra.mrb[12].mxu0 %vm378_vm2, %v664_v17 }
 0x3a5   : > { %1224 = vmatpush3.bf16.msra.mxu0 %v774_v18  ;;  %1225 = vmatprep.mubr.msk.bf16.mxu0 %vm1460_vm0, %v1459_v0 }
 0x3a6   : > { %1235 = vmatprep.subr.bf16.mxu0 %v1459_v0 }
 0x3a8   : > { %v873_v19 = vpop.xlane.xlu0 %872 }
 0x3a9   : > { %1342 = vrcp.f32 %v873_v19 }
 0x3ab   : > { %v1341_v20 = vpop.eup %1340 }
 0x3ac   : > { %v770_v21 = vmul.f32 %v1341_v20, %v1333_v5 }
 0x3ae   : > { %v771_v22 = vpack.c.bf16 %v770_v21, %v770_v21 }
 0x3b0   : > { %1226 = vmatmul.mubr.msk.bf16.vlgmr.msra.gmra.mrb[16].mxu0 %vm378_vm2, %v771_v22 }
 0x3b1   : > { %1236 = vmatpush3.bf16.msra.mxu0 %v774_v18  ;;  %1237 = vmatprep.mubr.msk.bf16.mxu0 %vm1460_vm0, %v1459_v0 }
 0x3b3   : > { %v1343_v23 = vpop.eup %1342 }
 0x3b4   : > { %v875_v24 = vmul.f32 %v1343_v23, %v1335_v7 }
 0x3b6   : > { %v876_v25 = vpack.c.bf16 %v875_v24, %v875_v24 }
 0x3b8   : > { %1238 = vmatmul.mubr.msk.bf16.vlgmr.msra.gmra.mrb[20].mxu0 %vm378_vm2, %v876_v25 }
 0x40e   : > { %v600_v26 = vpop.f32.mrb[8].mxu0 }
 0x40f   : > { %v1203_v27 = vpop.f32.mrb[9].mxu0  ;;  %v606_v0 = vpack.c.bf16 %v600_v26, %v600_v26 }
 0x410   : > { %v603_v28 = vpop.f32.mrb[10].mxu0 }
 0x411   : > { %v1204_v29 = vpop.f32.mrb[11].mxu0 }
 0x477   : > { %v702_v30 = vpop.f32.mrb[12].mxu0 }
 0x478   : > { %v708_v31 = vpack.c.bf16 %v702_v30, %v702_v30  ;;  %v1215_v32 = vpop.f32.mrb[13].mxu0 }
 0x479   : > { %v705_v33 = vpop.f32.mrb[14].mxu0 }
 0x47a   : > { %922 = vrot.lane.b32.xlu0 %v708_v31, %s1464_s8  ;;  %v1216_v35 = vpop.f32.mrb[15].mxu0  ;;  %s1374_s8 = scalar_lea.vmem %s1727_s28, 128 }
 0x47b   : > { %p1375_p8 = scmp.ne.s32.totalorder %s1727_s28, %s1374_s8  ;;  %p1382_p3 = scmp.lt.s32.totalorder %s1380_s7, %s1374_s8 }
 0x47d   : > { %p1376_p0 = pnand %p1375_p8, %p1794_p11  ;;  %p1383_p6 = por %p1382_p3, %p1381_p13 }
 0x47f   : > { %p1377_p7 = pneg %p1376_p0 }
 0x481   : > { %p1384_p4 = pnand %p1383_p6, %p1377_p7 }
 0x483   : > { %v813_v37 = vpop.f32.mrb[16].mxu0 }
 0x484   : > { %v819_v38 = vpack.c.bf16 %v813_v37, %v813_v37  ;;  %v1227_v39 = vpop.f32.mrb[17].mxu0 }
 0x485   : > { %v816_v40 = vpop.f32.mrb[18].mxu0 }
 0x486   : > { %925 = vrot.lane.b32.xlu1 %v819_v38, %s1465_s18  ;;  %v1228_v41 = vpop.f32.mrb[19].mxu0 }
 0x48b   : > { %v914_v42 = vpop.f32.mrb[20].mxu0 }
 0x48c   : > { %v920_v43 = vpack.c.bf16 %v914_v42, %v914_v42  ;;  %v1239_v44 = vpop.f32.mrb[21].mxu0 }
 0x48d   : > { %v917_v45 = vpop.f32.mrb[22].mxu0 }
 0x48e   : > { %928 = vrot.lane.b32.xlu1 %v920_v43, %s1466_s20  ;;  %v1240_v46 = vpop.f32.mrb[23].mxu0 }
 0x4ec   : > { %v923_v47 = vpop.permute.xlu0 %922 }
 0x4ed   : > { %v932_v49 = vsel %vm503_vm3, %v606_v0, %v923_v47 }
 0x4f8   : > { %v926_v48 = vpop.permute.xlu1 %925 }
 0x4f9   : > { %v934_v50 = vsel %vm378_vm2, %v932_v49, %v926_v48 }
 0x500   : > { %v929_v51 = vpop.permute.xlu1 %928 }
 0x501   : > { %v937_v52 = vsel %vm935_vm4, %v934_v50, %v929_v51 }
 0x502   : > { %1246 = vmatmul.mubr.msk.bf16.vlgmr.msra.gmra.mrb[20].mxu1 %vm332_vm1, %v937_v52 }
 0x5d5   : > { %v990_v53 = vpop.f32.mrb[20].mxu1 }
 0x5d6   : > { %996 = vst [vmem:[%s298_s9] sm:$0xff] %v990_v53  ;;  %v1247_v54 = vpop.f32.mrb[21].mxu1 }
 0x5d7   : > { %v993_v55 = vpop.f32.mrb[22].mxu1 }
 0x5d8   : > { %1387 = shalt.err (!%p1384_p4)
}
 0x5d9   : > { %s1388_s30 = scalar_lea.hbm %s1732_s17, 128  ;;  %s1392_s27 = scalar_lea.hbm %s1785_s6, 256 }
 0x5da   : > { %p1389_p10 = scmp.ne.s32.totalorder %s1732_s17, %s1388_s30  ;;  %p1393_p2 = scmp.lt.u32.totalorder %s1732_s17, %s1785_s6 }
 0x5db   : > { %p1394_p5 = scmp.lt.u32.totalorder %s1392_s27, %s1388_s30  ;;  %p1396_p8 = scmp.lt.u32.totalorder %s1388_s30, %s1732_s17 }
 0x5dc   : > { %p1390_p12 = pnand %p1389_p10, %p1794_p11 }
 0x5dd   : > { %p1395_p9 = por %p1394_p5, %p1393_p2 }
 0x5de   : > { %p1391_p1 = pneg %p1390_p12 }
 0x5df   : > { %p1397_p0 = por %p1396_p8, %p1395_p9 }
 0x5e1   : > { %p1398_p7 = pnand %p1397_p0, %p1391_p1 }
 0x5e3   : > { %1401 = shalt.err (!%p1398_p7)
}
 0x5e4   : > { %1251 = dma.vmem_to_hbm [thread:$0]  (%p1794_p11), %s1727_s28, 128, %s1732_s17, %s998_s19   ;;  %v1248_v56 = vpop.f32.mrb[23].mxu1 }
 0x5e5 PF: > { %s1024_s16 = sand.u32 1, %s1436_s21   ;;  %p1795_p13 = scmp.ne.s32.totalorder %s1790_s12, 0 }
 0x5e6   : > { %p1796_p3 = scmp.ge.s32.totalorder %s1456_s26, 2  ;;  %s1025_s13 = scalar_lea.sflag [#allocation6], %s1024_s16 }
 0x5e8   : > { %p1258_p6 = pnand %p1796_p3, %p1795_p13 }
 0x5ea   : > { %1431 = dma.done.wait (!%p1258_p6), %s1025_s13, 128  }
 0x5eb   : > { %1433 = vsyncadd (!%p1258_p6), %s1025_s13, 4294967168  ;;  %s22_s26 = sadd.s32 1, %s1456_s26   ;;  %s1797_s21 = smov %s1440_s22 }
 0x5ec   : > { %p19_p4 = scmp.ge.s32.totalorder %s22_s26, 4   ;;  %s1798_s22 = smov %s1444_s23 }
 0x5ed   : > { %s1799_s23 = smov %s1559_s11  ;;  %s1800_s24 = smov %s1452_s25 }
 0x5ee   : > { %s1801_s25 = smov %s1803_s29  ;;  %21 = sbr.rel (!%p19_p4) target bundleno = 6 (0x6), region = 96 }
 0x5f5   :  { %1030 = vsyncpa [#allocation5], 1 }
 0x5f6   :  { %1032 = vsyncpa [#allocation5 + $0x1], 1 }
 0x5f7   :  { %1033 = vsyncpa [#allocation6], 1 }
 0x5f8   :  { %1035 = vsyncpa [#allocation6 + $0x1], 1 }

</bundles_post_ra>
